<compile_context>
chip_gen: v5e
topology: v5e:2x2
jax: 0.10.0
libtpu: 0.0.40
codegen_flags: <defaults>
</compile_context>

<pallas_src>
import jax
import jax.numpy as jnp
from jax import lax
from jax.experimental import pallas as pl
from jax.experimental.pallas import tpu as pltpu


# ---------------------------------------------------------------------------
# Kernel
# ---------------------------------------------------------------------------
def _dsfin_kernel(x_ref, wci_ref, w1_ref, w2_ref, wf_ref, b_ref, o_ref):
    L = o_ref.shape[1]                               # W * c_out lanes
    x = x_ref[...]                                   # bf16 (rows, W*c_in)

    # Initial conv as one banded matmul; output lanes packed [path1 | path2].
    x_init = jnp.dot(x, wci_ref[...],
                     preferred_element_type=jnp.float32) + b_ref[0:1, :]

    # Branch 1: fused main|gate conv -> GLU -> residual -> ReLU.
    xp1 = x_init[:, :L]
    g1 = jnp.dot(xp1.astype(jnp.bfloat16), w1_ref[...],
                 preferred_element_type=jnp.float32) + b_ref[1:2, :]
    r1 = jnp.maximum(g1[:, :L] * jax.nn.sigmoid(g1[:, L:]) + xp1, 0.0)

    # Branch 2.
    xp2 = x_init[:, L:]
    g2 = jnp.dot(xp2.astype(jnp.bfloat16), w2_ref[...],
                 preferred_element_type=jnp.float32) + b_ref[2:3, :]
    r2 = jnp.maximum(g2[:, :L] * jax.nn.sigmoid(g2[:, L:]) + xp2, 0.0)

    # Fusion FC: a single matmul on the concatenated [r1 | r2] slab
    # (concat sits on a 128-lane boundary for lane-dense L).
    r = jnp.concatenate([r1, r2], axis=1).astype(jnp.bfloat16)
    acc = jnp.dot(r, wf_ref[...],
                  preferred_element_type=jnp.float32) + b_ref[3:4, :L]
    o_ref[...] = acc.astype(o_ref.dtype)


# ---------------------------------------------------------------------------
# Wrapper-side weight packing (call ONCE; depends only on the parameters)
# ---------------------------------------------------------------------------
def _band_conv_matrix(wt, width, pad):
    """(K, cin, cout) conv taps -> banded (W*cin, W*cout) matrix.

    y_fold = x_fold @ M reproduces the zero-padded 1-D conv along W when the
    lane order is (w major, channel minor)."""
    k, cin, cout = wt.shape
    w_in = jnp.arange(width)[:, None]
    w_out = jnp.arange(width)[None, :]
    tap = w_in - w_out + pad                          # (W, W)
    valid = (tap >= 0) & (tap < k)
    blocks = wt[jnp.clip(tap, 0, k - 1)]              # (W, W, cin, cout)
    blocks = jnp.where(valid[:, :, None, None], blocks, 0.0)
    return jnp.transpose(blocks, (0, 2, 1, 3)).reshape(width * cin, width * cout)


def pack_dsfin_params(params, width, kernel_size, padding,
                      dot_dtype=jnp.bfloat16):
    """Pack all conv/FC weights into banded-matmul form.  Hot-path callers
    should cache the result (it only depends on the parameters)."""
    # The torch module only type-checks when the conv preserves W.
    assert kernel_size == 2 * padding + 1, "requires same-length conv (K == 2P+1)"
    c_out = params["b_fc"].shape[-1]
    w = width
    L = w * c_out

    # Initial conv: reorder output lanes to [path1 (w,c) | path2 (w,c)].
    mi = _band_conv_matrix(params["w_init"], w, padding)          # (W*cin, W*2c)
    mi = mi.reshape(-1, w, 2 * c_out)
    wci = jnp.concatenate([mi[:, :, :c_out].reshape(-1, L),
                           mi[:, :, c_out:].reshape(-1, L)], axis=1)
    bci = jnp.concatenate([jnp.tile(params["b_init"][:, :c_out], (1, w)),
                           jnp.tile(params["b_init"][:, c_out:], (1, w))], axis=1)

    def branch(wm, wg, bm, bg):
        wmat = jnp.concatenate([_band_conv_matrix(wm, w, padding),
                                _band_conv_matrix(wg, w, padding)], axis=1)
        bvec = jnp.concatenate([jnp.tile(bm, (1, w)), jnp.tile(bg, (1, w))], axis=1)
        return wmat, bvec

    w1, b1 = branch(params["w1m"], params["w1g"], params["b1m"], params["b1g"])
    w2, b2 = branch(params["w2m"], params["w2g"], params["b2m"], params["b2g"])

    # Fusion FC as one (2L, L) block matrix acting on [r1 | r2].
    # TODO(synk): for large W*C this kron/banded formulation carries ~K/W and
    # 1/W density of useful MACs; switch to rolled K-tap conv matmuls plus a
    # dense channel contraction in that regime.
    eye = jnp.eye(w, dtype=jnp.float32)
    wf = jnp.concatenate([jnp.kron(eye, params["w_fc"][:c_out, :]),
                          jnp.kron(eye, params["w_fc"][c_out:, :])], axis=0)
    bf = jnp.concatenate([jnp.tile(params["b_fc"], (1, w)),
                          jnp.zeros((1, L), jnp.float32)], axis=1)

    biases = jnp.concatenate([bci, b1, b2, bf], axis=0)           # (4, 2L) f32

    dd = dot_dtype
    return (wci.astype(dd), w1.astype(dd), w2.astype(dd), wf.astype(dd),
            biases.astype(jnp.float32))


# ---------------------------------------------------------------------------
# Tiling / VMEM helpers
# ---------------------------------------------------------------------------
def _choose_tiling(rows: int, target: int = 1024):
    """Return (padded_rows, block_rows).  block_rows is a multiple of 16 (bf16
    sublane packing), <= target, and divides padded_rows.  Small problems get a
    single grid step (better MXU occupancy on single-TC v5e/v6e; the ~0.35 us
    per-step pipeline overhead is not paid)."""
    ceil_to = lambda v, m: -(-v // m) * m
    rows16 = ceil_to(rows, 16)
    cap = min(target, rows16)
    best, d = 16, 16
    while d <= cap:                                   # <= 64 iterations
        if rows16 % d == 0:
            best = d
        d += 16
    if best == rows16 or best >= 128:
        return rows16, best
    # Degenerate divisor structure: pad up to a multiple of a big tile instead.
    br = max(16, (cap // 16) * 16)
    return ceil_to(rows16, br), br


def _vmem_bytes_estimate(br, lanes_in, lanes_out, packed):
    weights = sum(int(p.size) * p.dtype.itemsize for p in packed)  # Buffered(1)
    io = 2 * br * lanes_in * 2 + 2 * br * lanes_out * 4            # x (bf16) + out (f32), 2-deep
    interm = 10 * br * lanes_out * 4                               # f32 temporaries
    return weights + io + interm


# ---------------------------------------------------------------------------
# Forward
# ---------------------------------------------------------------------------
def dsfin_forward(x_nchw, packed, *, out_dtype=jnp.float32, row_tile=1024):
    wci, w1, w2, wf, biases = packed
    n, c_in, h, width = x_nchw.shape
    lanes_out = wf.shape[1]
    c_out = lanes_out // width
    lanes_in = width * c_in
    rows = n * h

    # NCHW -> (N*H, W*C_in) with (w, channel) folded onto the lane axis; bf16
    # halves the input DMA (matmul operands are bf16 anyway).
    # TODO(synk): accept NHWC input directly to drop this relayout entirely.
    x2d = jnp.transpose(x_nchw, (0, 2, 3, 1)).reshape(rows, lanes_in)
    x2d = x2d.astype(jnp.bfloat16)

    rows_pad, br = _choose_tiling(rows, target=row_tile)
    if rows_pad != rows:
        x2d = jnp.pad(x2d, ((0, rows_pad - rows), (0, 0)))
    grid = (rows_pad // br,)

    # Grid-invariant weights: single-buffered (VMEM headroom, esp. v7x 64 MiB).
    weight_specs = [pl.BlockSpec(p.shape, lambda i: (0, 0),
                                 pipeline_mode=pl.Buffered(1))
                    for p in packed]

    cp_kwargs = dict(dimension_semantics=("parallel",))
    est = _vmem_bytes_estimate(br, lanes_in, lanes_out, packed)
    if est > 30 * 1024 * 1024:
        # Only kicks in when scaling rows / W*C well past the test shape.
        cp_kwargs["vmem_limit_bytes"] = min(int(est * 1.3), 100 * 1024 * 1024)

    out2d = pl.pallas_call(
        _dsfin_kernel,
        out_shape=jax.ShapeDtypeStruct((rows_pad, lanes_out), out_dtype),
        grid=grid,
        in_specs=[pl.BlockSpec((br, lanes_in), lambda i: (i, 0))] + weight_specs,
        out_specs=pl.BlockSpec((br, lanes_out), lambda i: (i, 0)),
        compiler_params=pltpu.CompilerParams(**cp_kwargs),
    )(x2d, *packed)

    # (N*H, W*c_out) is exactly the row-major layout of (N, H, W, c_out).
    return out2d[:rows].reshape(n, h, width, c_out)


# ---------------------------------------------------------------------------
# Params + pure-JAX reference (mirrors the PyTorch forward, NCHW)
# ---------------------------------------------------------------------------
def init_params(key, c_in: int, c_out: int, k: int):
    keys = jax.random.split(key, 12)

    def wconv(kk, cin, cout):   # (K, cin, cout): tap-major, channels last
        return 0.1 * jax.random.normal(kk, (k, cin, cout), jnp.float32)

    def bias(kk, cout):
        return 0.1 * jax.random.normal(kk, (1, cout), jnp.float32)

    return dict(
        w_init=wconv(keys[0], c_in, 2 * c_out), b_init=bias(keys[1], 2 * c_out),
        w1m=wconv(keys[2], c_out, c_out), b1m=bias(keys[3], c_out),
        w1g=wconv(keys[4], c_out, c_out), b1g=bias(keys[5], c_out),
        w2m=wconv(keys[6], c_out, c_out), b2m=bias(keys[7], c_out),
        w2g=wconv(keys[8], c_out, c_out), b2g=bias(keys[9], c_out),
        w_fc=0.1 * jax.random.normal(keys[10], (2 * c_out, c_out), jnp.float32),
        b_fc=0.1 * jax.random.normal(keys[11], (1, c_out), jnp.float32),
    )


def dsfin_reference(x, params, padding: int):
    def conv(inp, w, b):
        # w: (K, cin, cout) -> OIHW (cout, cin, 1, K); torch conv == cross-correlation
        w_oihw = jnp.transpose(w, (2, 1, 0))[:, :, None, :]
        y = lax.conv_general_dilated(
            inp, w_oihw, window_strides=(1, 1),
            padding=((0, 0), (padding, padding)),
            dimension_numbers=("NCHW", "OIHW", "NCHW"))
        return y + b[0][None, :, None, None]

    x_init = conv(x, params["w_init"], params["b_init"])
    c = x_init.shape[1] // 2
    xp1, xp2 = x_init[:, :c], x_init[:, c:]
    p1 = conv(xp1, params["w1m"], params["b1m"]) * jax.nn.sigmoid(
        conv(xp1, params["w1g"], params["b1g"]))
    p2 = conv(xp2, params["w2m"], params["b2m"]) * jax.nn.sigmoid(
        conv(xp2, params["w2g"], params["b2g"]))
    fused = jnp.concatenate([p1, p2], axis=1)
    out = jax.nn.relu(fused + x_init)
    out = jnp.transpose(out, (0, 2, 3, 1))                # NCHW -> NHWC
    return out @ params["w_fc"] + params["b_fc"][0]


if __name__ == "__main__":
    key = jax.random.PRNGKey(0)
    kx, kp = jax.random.split(key)

    N, C_IN, H, W = 2, 4, 16, 16
    C_OUT, K, P = 8, 3, 1

    x = jax.random.normal(kx, (N, C_IN, H, W), jnp.float32)
    params = init_params(kp, C_IN, C_OUT, K)

    # Pack weights ONCE (hoisted out of the per-call hot path), jit the forward.
    packed = jax.block_until_ready(pack_dsfin_params(params, W, K, P))
    fwd = jax.jit(dsfin_forward)

    out = jax.block_until_ready(fwd(x, packed))
    assert out.shape == (N, H, W, C_OUT), out.shape

    ref = dsfin_reference(x, params, P)
    max_err = float(jnp.max(jnp.abs(out - ref)))
    # bf16 matmul operands (f32 accumulate) => slightly looser tolerance.
    if not bool(jnp.allclose(out, ref, atol=2e-2, rtol=2e-2)):
        raise AssertionError(f"Pallas kernel mismatch vs reference, max err={max_err}")

    print("KERNEL_OK")
</pallas_src>

<mosaic_0001>
module attributes {stable_mosaic.version = 11 : i64} {
  func.func @_dsfin_kernel(%arg0: i32, %arg1: memref<32x64xbf16, #tpu.memory_space<vmem>>, %arg2: memref<64x256xbf16, #tpu.memory_space<vmem>>, %arg3: memref<128x256xbf16, #tpu.memory_space<vmem>>, %arg4: memref<128x256xbf16, #tpu.memory_space<vmem>>, %arg5: memref<256x128xbf16, #tpu.memory_space<vmem>>, %arg6: memref<4x256xf32, #tpu.memory_space<vmem>>, %arg7: memref<32x128xf32, #tpu.memory_space<vmem>>) attributes {dimension_semantics = [#tpu.dimension_semantics<parallel>], iteration_bounds = array<i64: 1>, scalar_prefetch = 0 : i64, scratch_operands = 0 : i64, tpu.core_type = #tpu.core_type<tc>, window_params = [{transform_indices = @transform_0, window_bounds = array<i64: 32, 64>}, {pipeline_mode = #tpu.pipeline_mode<synchronous>, transform_indices = @transform_1, window_bounds = array<i64: 64, 256>}, {pipeline_mode = #tpu.pipeline_mode<synchronous>, transform_indices = @transform_2, window_bounds = array<i64: 128, 256>}, {pipeline_mode = #tpu.pipeline_mode<synchronous>, transform_indices = @transform_3, window_bounds = array<i64: 128, 256>}, {pipeline_mode = #tpu.pipeline_mode<synchronous>, transform_indices = @transform_4, window_bounds = array<i64: 256, 128>}, {pipeline_mode = #tpu.pipeline_mode<synchronous>, transform_indices = @transform_5, window_bounds = array<i64: 4, 256>}, {transform_indices = @transform_6, window_bounds = array<i64: 32, 128>}]} {
    %c0 = arith.constant 0 : index
    %c0_0 = arith.constant 0 : index
    %0 = vector.load %arg1[%c0, %c0_0] : memref<32x64xbf16, #tpu.memory_space<vmem>>, vector<32x64xbf16>
    %c0_1 = arith.constant 0 : index
    %c0_2 = arith.constant 0 : index
    %1 = vector.load %arg2[%c0_1, %c0_2] : memref<64x256xbf16, #tpu.memory_space<vmem>>, vector<64x256xbf16>
    %cst = arith.constant dense<0.000000e+00> : vector<32x256xf32>
    %2 = tpu.matmul %0, %1, %cst {dimension_numbers = #tpu.dot_dimension_numbers<[1], [0], [0], [1], [0, 0, 1, 1], [], []>} : vector<32x64xbf16>, vector<64x256xbf16>, vector<32x256xf32> -> vector<32x256xf32>
    %c0_3 = arith.constant 0 : index
    %c0_4 = arith.constant 0 : index
    %3 = vector.load %arg6[%c0_3, %c0_4] : memref<4x256xf32, #tpu.memory_space<vmem>>, vector<1x256xf32>
    %4 = vector.broadcast %3 : vector<1x256xf32> to vector<32x256xf32>
    %5 = arith.addf %2, %4 : vector<32x256xf32>
    %6 = vector.extract_strided_slice %5 {offsets = [0, 0], sizes = [32, 128], strides = [1, 1]} : vector<32x256xf32> to vector<32x128xf32>
    %7 = arith.truncf %6 : vector<32x128xf32> to vector<32x128xbf16>
    %c0_5 = arith.constant 0 : index
    %c0_6 = arith.constant 0 : index
    %8 = vector.load %arg3[%c0_5, %c0_6] : memref<128x256xbf16, #tpu.memory_space<vmem>>, vector<128x256xbf16>
    %cst_7 = arith.constant dense<0.000000e+00> : vector<32x256xf32>
    %9 = tpu.matmul %7, %8, %cst_7 {dimension_numbers = #tpu.dot_dimension_numbers<[1], [0], [0], [1], [0, 0, 1, 1], [], []>} : vector<32x128xbf16>, vector<128x256xbf16>, vector<32x256xf32> -> vector<32x256xf32>
    %c1 = arith.constant 1 : index
    %c0_8 = arith.constant 0 : index
    %10 = vector.load %arg6[%c1, %c0_8] : memref<4x256xf32, #tpu.memory_space<vmem>>, vector<1x256xf32>
    %11 = vector.broadcast %10 : vector<1x256xf32> to vector<32x256xf32>
    %12 = arith.addf %9, %11 : vector<32x256xf32>
    %13 = vector.extract_strided_slice %12 {offsets = [0, 0], sizes = [32, 128], strides = [1, 1]} : vector<32x256xf32> to vector<32x128xf32>
    %14 = vector.extract_strided_slice %12 {offsets = [0, 128], sizes = [32, 128], strides = [1, 1]} : vector<32x256xf32> to vector<32x128xf32>
    %15 = arith.negf %14 : vector<32x128xf32>
    %16 = math.exp %15 : vector<32x128xf32>
    %cst_9 = arith.constant 1.000000e+00 : f32
    %17 = vector.broadcast %cst_9 : f32 to vector<32x128xf32>
    %18 = arith.addf %17, %16 : vector<32x128xf32>
    %19 = arith.divf %17, %18 : vector<32x128xf32>
    %20 = arith.mulf %13, %19 : vector<32x128xf32>
    %21 = arith.addf %20, %6 : vector<32x128xf32>
    %cst_10 = arith.constant 0.000000e+00 : f32
    %22 = vector.broadcast %cst_10 : f32 to vector<32x128xf32>
    %23 = arith.maximumf %21, %22 : vector<32x128xf32>
    %24 = vector.extract_strided_slice %5 {offsets = [0, 128], sizes = [32, 128], strides = [1, 1]} : vector<32x256xf32> to vector<32x128xf32>
    %25 = arith.truncf %24 : vector<32x128xf32> to vector<32x128xbf16>
    %c0_11 = arith.constant 0 : index
    %c0_12 = arith.constant 0 : index
    %26 = vector.load %arg4[%c0_11, %c0_12] : memref<128x256xbf16, #tpu.memory_space<vmem>>, vector<128x256xbf16>
    %cst_13 = arith.constant dense<0.000000e+00> : vector<32x256xf32>
    %27 = tpu.matmul %25, %26, %cst_13 {dimension_numbers = #tpu.dot_dimension_numbers<[1], [0], [0], [1], [0, 0, 1, 1], [], []>} : vector<32x128xbf16>, vector<128x256xbf16>, vector<32x256xf32> -> vector<32x256xf32>
    %c2 = arith.constant 2 : index
    %c0_14 = arith.constant 0 : index
    %28 = vector.load %arg6[%c2, %c0_14] : memref<4x256xf32, #tpu.memory_space<vmem>>, vector<1x256xf32>
    %29 = vector.broadcast %28 : vector<1x256xf32> to vector<32x256xf32>
    %30 = arith.addf %27, %29 : vector<32x256xf32>
    %31 = vector.extract_strided_slice %30 {offsets = [0, 0], sizes = [32, 128], strides = [1, 1]} : vector<32x256xf32> to vector<32x128xf32>
    %32 = vector.extract_strided_slice %30 {offsets = [0, 128], sizes = [32, 128], strides = [1, 1]} : vector<32x256xf32> to vector<32x128xf32>
    %33 = arith.negf %32 : vector<32x128xf32>
    %34 = math.exp %33 : vector<32x128xf32>
    %cst_15 = arith.constant 1.000000e+00 : f32
    %35 = vector.broadcast %cst_15 : f32 to vector<32x128xf32>
    %36 = arith.addf %35, %34 : vector<32x128xf32>
    %37 = arith.divf %35, %36 : vector<32x128xf32>
    %38 = arith.mulf %31, %37 : vector<32x128xf32>
    %39 = arith.addf %38, %24 : vector<32x128xf32>
    %cst_16 = arith.constant 0.000000e+00 : f32
    %40 = vector.broadcast %cst_16 : f32 to vector<32x128xf32>
    %41 = arith.maximumf %39, %40 : vector<32x128xf32>
    %42 = tpu.concatenate %23, %41 in 1 : vector<32x128xf32>, vector<32x128xf32> -> vector<32x256xf32>
    %43 = arith.truncf %42 : vector<32x256xf32> to vector<32x256xbf16>
    %c0_17 = arith.constant 0 : index
    %c0_18 = arith.constant 0 : index
    %44 = vector.load %arg5[%c0_17, %c0_18] : memref<256x128xbf16, #tpu.memory_space<vmem>>, vector<256x128xbf16>
    %cst_19 = arith.constant dense<0.000000e+00> : vector<32x128xf32>
    %45 = tpu.matmul %43, %44, %cst_19 {dimension_numbers = #tpu.dot_dimension_numbers<[1], [0], [0], [1], [0, 0, 1, 1], [], []>} : vector<32x256xbf16>, vector<256x128xbf16>, vector<32x128xf32> -> vector<32x128xf32>
    %c3 = arith.constant 3 : index
    %c0_20 = arith.constant 0 : index
    %46 = vector.load %arg6[%c3, %c0_20] : memref<4x256xf32, #tpu.memory_space<vmem>>, vector<1x128xf32>
    %47 = vector.broadcast %46 : vector<1x128xf32> to vector<32x128xf32>
    %48 = arith.addf %45, %47 : vector<32x128xf32>
    %c0_21 = arith.constant 0 : index
    %c0_22 = arith.constant 0 : index
    %49 = vector.load %arg7[%c0_21, %c0_22] : memref<32x128xf32, #tpu.memory_space<vmem>>, vector<32x128xf32>
    tpu.vector_store %arg7[%c0_21, %c0_22], %48 {strides = array<i32>} : memref<32x128xf32, #tpu.memory_space<vmem>>, vector<32x128xf32>,
    return
  }
  func.func @transform_0(%arg0: i32) -> (i32, i32) {
    %c0_i32 = arith.constant 0 : i32
    %c0_i32_0 = arith.constant 0 : i32
    return %arg0, %c0_i32 : i32, i32
  }
  func.func @transform_1(%arg0: i32) -> (i32, i32) {
    %c0_i32 = arith.constant 0 : i32
    %c0_i32_0 = arith.constant 0 : i32
    %c0_i32_1 = arith.constant 0 : i32
    return %c0_i32, %c0_i32_0 : i32, i32
  }
  func.func @transform_2(%arg0: i32) -> (i32, i32) {
    %c0_i32 = arith.constant 0 : i32
    %c0_i32_0 = arith.constant 0 : i32
    %c0_i32_1 = arith.constant 0 : i32
    return %c0_i32, %c0_i32_0 : i32, i32
  }
  func.func @transform_3(%arg0: i32) -> (i32, i32) {
    %c0_i32 = arith.constant 0 : i32
    %c0_i32_0 = arith.constant 0 : i32
    %c0_i32_1 = arith.constant 0 : i32
    return %c0_i32, %c0_i32_0 : i32, i32
  }
  func.func @transform_4(%arg0: i32) -> (i32, i32) {
    %c0_i32 = arith.constant 0 : i32
    %c0_i32_0 = arith.constant 0 : i32
    %c0_i32_1 = arith.constant 0 : i32
    return %c0_i32, %c0_i32_0 : i32, i32
  }
  func.func @transform_5(%arg0: i32) -> (i32, i32) {
    %c0_i32 = arith.constant 0 : i32
    %c0_i32_0 = arith.constant 0 : i32
    %c0_i32_1 = arith.constant 0 : i32
    return %c0_i32, %c0_i32_0 : i32, i32
  }
  func.func @transform_6(%arg0: i32) -> (i32, i32) {
    %c0_i32 = arith.constant 0 : i32
    %c0_i32_0 = arith.constant 0 : i32
    return %arg0, %c0_i32 : i32, i32
  }
}

</mosaic_0001>

<bundles_post_ra>
// kernel: dsfin_forward.1
= control target key start
LH: loop header
LB: loop body
LE: loop exit
PB: predicated region body
PF: predicated region fallthrough
CT: control target
= control target key end

     0   :  { %vm92_vm0 = vcmask 523264   ;;  %s1642_s1 = inlined_call_operand.vmem [shape: bf16[64,256], index: 1, kind: input, shape index: {}]   ;;  %s1643_s2 = inlined_call_operand.vmem [shape: bf16[128,256], index: 2, kind: input, shape index: {}]   ;;  %s1644_s3 = inlined_call_operand.vmem [shape: bf16[128,256], index: 3, kind: input, shape index: {}]   ;;  %s1645_s0 = inlined_call_operand.vmem [shape: bf16[32,64], index: 0, kind: input, shape index: {}]   ;;  %s1646_s5 = inlined_call_operand.vmem [shape: f32[4,256], index: 5, kind: input, shape index: {}]   ;;  %s1647_s4 = inlined_call_operand.vmem [shape: bf16[256,128], index: 4, kind: input, shape index: {}]   ;;  %s1648_s6 = inlined_call_operand.vmem [shape: f32[32,128], index: 6, kind: output, shape index: {}]  }
   0x1   :  { %v813_v0 = vld [vmem:[%s1642_s1 + $0x30] sm:$0xf]  ;;  %v1034_v1 = vld [vmem:[%s1642_s1 + $0x34] sm:$0xf0]  ;;  %v1033_v2 = vld [vmem:[%s1642_s1 + $0x34] sm:$0xf] }
   0x2   :  { %v814_v3 = vor.u32 %v1034_v1, %v813_v0  ;;  %v815_v4 = vld [vmem:[%s1642_s1 + $0x38] sm:$0xf0]  ;;  %v805_v5 = vld [vmem:[%s1642_s1 + $0x20] sm:$0xf]  ;;  %v1032_v6 = vld [vmem:[%s1642_s1 + $0x24] sm:$0xf0] }
   0x3   :  { %v818_v7 = vor.u32 %v1033_v2, %v815_v4  ;;  %v1031_v8 = vld [vmem:[%s1642_s1 + $0x24] sm:$0xf]  ;;  %v807_v9 = vld [vmem:[%s1642_s1 + $0x28] sm:$0xf0]  ;;  %v806_v10 = vor.u32 %v1032_v6, %v805_v5  ;;  %v797_v12 = vld [vmem:[%s1642_s1 + $0x10] sm:$0xf] }
   0x4   :  { %103 = vmatpush.bf16.msra.mxu0 %v814_v3  ;;  %v810_v11 = vor.u32 %v1031_v8, %v807_v9  ;;  %v1030_v13 = vld [vmem:[%s1642_s1 + $0x14] sm:$0xf0]  ;;  %v1029_v14 = vld [vmem:[%s1642_s1 + $0x14] sm:$0xf]  ;;  %v799_v15 = vld [vmem:[%s1642_s1 + $0x18] sm:$0xf0] }
   0x5   :  { %122 = vmatpush.bf16.msra.mxu1 %v818_v7  ;;  %v789_v16 = vld [vmem:[%s1642_s1] sm:$0xf]  ;;  %v1028_v17 = vld [vmem:[%s1642_s1 + $0x4] sm:$0xf0]  ;;  %v882_v18 = vld [vmem:[%s1643_s2 + $0x70] sm:$0xf]  ;;  %v798_v21 = vor.u32 %v1030_v13, %v797_v12  ;;  %v802_v26 = vor.u32 %v1029_v14, %v799_v15 }
   0x6   :  { %v1050_v19 = vld [vmem:[%s1643_s2 + $0x74] sm:$0xf0]  ;;  %v1049_v20 = vld [vmem:[%s1643_s2 + $0x74] sm:$0xf]  ;;  %v1027_v22 = vld [vmem:[%s1642_s1 + $0x4] sm:$0xf]  ;;  %v790_v38 = vor.u32 %v1028_v17, %v789_v16 }
   0x7   :  { %v791_v23 = vld [vmem:[%s1642_s1 + $0x8] sm:$0xf0]  ;;  %v883_v24 = vor.u32 %v1050_v19, %v882_v18  ;;  %v884_v25 = vld [vmem:[%s1643_s2 + $0x78] sm:$0xf0]  ;;  %v951_v28 = vld [vmem:[%s1644_s3 + $0x70] sm:$0xf] }
   0x8   :  { %104 = vmatpush.bf16.msra.mxu0 %v806_v10  ;;  %v887_v27 = vor.u32 %v1049_v20, %v884_v25  ;;  %v1066_v29 = vld [vmem:[%s1644_s3 + $0x74] sm:$0xf0]  ;;  %v874_v30 = vld [vmem:[%s1643_s2 + $0x60] sm:$0xf]  ;;  %v1048_v31 = vld [vmem:[%s1643_s2 + $0x64] sm:$0xf0]  ;;  %v794_v41 = vor.u32 %v1027_v22, %v791_v23 }
   0x9   :  { %123 = vmatpush.bf16.msra.mxu1 %v810_v11  ;;  %242 = vmatpush.bf16.msra.mxu2 %v883_v24  ;;  %v1047_v32 = vld [vmem:[%s1643_s2 + $0x64] sm:$0xf]  ;;  %v876_v33 = vld [vmem:[%s1643_s2 + $0x68] sm:$0xf0]  ;;  %v1065_v34 = vld [vmem:[%s1644_s3 + $0x74] sm:$0xf]  ;;  %v875_v36 = vor.u32 %v1048_v31, %v874_v30  ;;  %v952_v43 = vor.u32 %v1066_v29, %v951_v28 }
   0xa   :  { %261 = vmatpush.bf16.msra.mxu3 %v887_v27  ;;  %v953_v35 = vld [vmem:[%s1644_s3 + $0x78] sm:$0xf0]  ;;  %v879_v37 = vor.u32 %v1047_v32, %v876_v33  ;;  %v866_v39 = vld [vmem:[%s1643_s2 + $0x50] sm:$0xf]  ;;  %v1046_v40 = vld [vmem:[%s1643_s2 + $0x54] sm:$0xf0] }
   0xb   :  { %v1025_v42 = vld [vmem:[%s1645_s0] sm:$0xff]  ;;  %v1045_v44 = vld [vmem:[%s1643_s2 + $0x54] sm:$0xf]  ;;  %v868_v45 = vld [vmem:[%s1643_s2 + $0x58] sm:$0xf0]  ;;  %v956_v46 = vor.u32 %v1065_v34, %v953_v35  ;;  %v867_v50 = vor.u32 %v1046_v40, %v866_v39 }
   0xc   :  { %105 = vmatpush.bf16.msra.mxu0 %v798_v21  ;;  %v943_v47 = vld [vmem:[%s1644_s3 + $0x60] sm:$0xf]  ;;  %v1064_v48 = vld [vmem:[%s1644_s3 + $0x64] sm:$0xf0]  ;;  %v1063_v49 = vld [vmem:[%s1644_s3 + $0x64] sm:$0xf]  ;;  %v871_v52 = vor.u32 %v1045_v44, %v868_v45 }
   0xd   :  { %124 = vmatpush.bf16.msra.mxu1 %v802_v26  ;;  %243 = vmatpush.bf16.msra.mxu2 %v875_v36  ;;  %v945_v51 = vld [vmem:[%s1644_s3 + $0x68] sm:$0xf0]  ;;  %v858_v53 = vld [vmem:[%s1643_s2 + $0x40] sm:$0xf]  ;;  %v1044_v54 = vld [vmem:[%s1643_s2 + $0x44] sm:$0xf0]  ;;  %v944_v57 = vor.u32 %v1064_v48, %v943_v47 }
   0xe   :  { %262 = vmatpush.bf16.msra.mxu3 %v879_v37  ;;  %v1043_v55 = vld [vmem:[%s1643_s2 + $0x44] sm:$0xf]  ;;  %v860_v56 = vld [vmem:[%s1643_s2 + $0x48] sm:$0xf0]  ;;  %v948_v58 = vor.u32 %v1063_v49, %v945_v51  ;;  %v935_v59 = vld [vmem:[%s1644_s3 + $0x50] sm:$0xf]  ;;  %v859_v62 = vor.u32 %v1044_v54, %v858_v53 }
   0xf   :  { %v1062_v60 = vld [vmem:[%s1644_s3 + $0x54] sm:$0xf0]  ;;  %v1061_v61 = vld [vmem:[%s1644_s3 + $0x54] sm:$0xf]  ;;  %v937_v63 = vld [vmem:[%s1644_s3 + $0x58] sm:$0xf0]  ;;  %v863_v0 = vor.u32 %v1043_v55, %v860_v56 }
  0x10   :  { %106 = vmatpush.bf16.msra.mxu0 %v790_v38  ;;  %v850_v1 = vld [vmem:[%s1643_s2 + $0x30] sm:$0xf]  ;;  %v1042_v2 = vld [vmem:[%s1643_s2 + $0x34] sm:$0xf0]  ;;  %v1041_v3 = vld [vmem:[%s1643_s2 + $0x34] sm:$0xf]  ;;  %v936_v5 = vor.u32 %v1062_v60, %v935_v59  ;;  %v940_v6 = vor.u32 %v1061_v61, %v937_v63 }
  0x11   :  { %125 = vmatpush.bf16.msra.mxu1 %v794_v41  ;;  %244 = vmatpush.bf16.msra.mxu2 %v867_v50  ;;  %v852_v4 = vld [vmem:[%s1643_s2 + $0x38] sm:$0xf0]  ;;  %v927_v7 = vld [vmem:[%s1644_s3 + $0x40] sm:$0xf]  ;;  %v1060_v8 = vld [vmem:[%s1644_s3 + $0x44] sm:$0xf0]  ;;  %v851_v9 = vor.u32 %v1042_v2, %v850_v1 }
  0x12   :  { %263 = vmatpush.bf16.msra.mxu3 %v871_v52  ;;  %v1059_v10 = vld [vmem:[%s1644_s3 + $0x44] sm:$0xf]  ;;  %v929_v11 = vld [vmem:[%s1644_s3 + $0x48] sm:$0xf0]  ;;  %v855_v12 = vor.u32 %v1041_v3, %v852_v4  ;;  %v928_v13 = vor.u32 %v1060_v8, %v927_v7  ;;  %v919_v15 = vld [vmem:[%s1644_s3 + $0x30] sm:$0xf] }
  0x13   :  { %819 = vmatmul.msk.bf16.vlgmr.msra.gmra.mxu0 %vm92_vm0, %v1025_v42  ;;  %v932_v14 = vor.u32 %v1059_v10, %v929_v11  ;;  %v1058_v16 = vld [vmem:[%s1644_s3 + $0x34] sm:$0xf0]  ;;  %v1057_v17 = vld [vmem:[%s1644_s3 + $0x34] sm:$0xf]  ;;  %v921_v18 = vld [vmem:[%s1644_s3 + $0x38] sm:$0xf0] }
  0x14   :  { %473 = vmatpush.bf16.msrb.mxu0 %v952_v43  ;;  %821 = vmatmul.msk.bf16.vlgmr.msra.gmra.mxu1 %vm92_vm0, %v1025_v42  ;;  %v920_v19 = vor.u32 %v1058_v16, %v919_v15  ;;  %v924_v20 = vor.u32 %v1057_v17, %v921_v18  ;;  %v1026_v21 = vld [vmem:[%s1645_s0 + $0x8] sm:$0xff]  ;;  %v842_v22 = vld [vmem:[%s1643_s2 + $0x20] sm:$0xf]  ;;  %v1039_v24 = vld [vmem:[%s1643_s2 + $0x24] sm:$0xf] }
  0x15   :  { %492 = vmatpush.bf16.msrb.mxu1 %v956_v46  ;;  %245 = vmatpush.bf16.msra.mxu2 %v859_v62  ;;  %v1040_v23 = vld [vmem:[%s1643_s2 + $0x24] sm:$0xf0]  ;;  %v844_v26 = vld [vmem:[%s1643_s2 + $0x28] sm:$0xf0]  ;;  %v911_v27 = vld [vmem:[%s1644_s3 + $0x20] sm:$0xf] }
  0x16   :  { %264 = vmatpush.bf16.msra.mxu3 %v863_v0  ;;  %v843_v25 = vor.u32 %v1040_v23, %v842_v22  ;;  %v847_v28 = vor.u32 %v1039_v24, %v844_v26  ;;  %v1056_v29 = vld [vmem:[%s1644_s3 + $0x24] sm:$0xf0]  ;;  %v1055_v30 = vld [vmem:[%s1644_s3 + $0x24] sm:$0xf]  ;;  %v913_v31 = vld [vmem:[%s1644_s3 + $0x28] sm:$0xf0] }
  0x17   :  { %v912_v32 = vor.u32 %v1056_v29, %v911_v27  ;;  %v916_v33 = vor.u32 %v1055_v30, %v913_v31  ;;  %v834_v34 = vld [vmem:[%s1643_s2 + $0x10] sm:$0xf]  ;;  %v1038_v35 = vld [vmem:[%s1643_s2 + $0x14] sm:$0xf0]  ;;  %v1037_v36 = vld [vmem:[%s1643_s2 + $0x14] sm:$0xf] }
  0x18   :  { %474 = vmatpush.bf16.msrb.mxu0 %v944_v57  ;;  %v835_v37 = vor.u32 %v1038_v35, %v834_v34  ;;  %v836_v38 = vld [vmem:[%s1643_s2 + $0x18] sm:$0xf0]  ;;  %v903_v39 = vld [vmem:[%s1644_s3 + $0x10] sm:$0xf]  ;;  %v1054_v40 = vld [vmem:[%s1644_s3 + $0x14] sm:$0xf0] }
  0x19   :  { %493 = vmatpush.bf16.msrb.mxu1 %v948_v58  ;;  %246 = vmatpush.bf16.msra.mxu2 %v851_v9  ;;  %v839_v41 = vor.u32 %v1037_v36, %v836_v38  ;;  %v904_v42 = vor.u32 %v1054_v40, %v903_v39  ;;  %v1053_v43 = vld [vmem:[%s1644_s3 + $0x14] sm:$0xf]  ;;  %v905_v44 = vld [vmem:[%s1644_s3 + $0x18] sm:$0xf0]  ;;  %v826_v46 = vld [vmem:[%s1643_s2] sm:$0xf] }
  0x1a   :  { %265 = vmatpush.bf16.msra.mxu3 %v855_v12  ;;  %v908_v45 = vor.u32 %v1053_v43, %v905_v44  ;;  %v1036_v47 = vld [vmem:[%s1643_s2 + $0x4] sm:$0xf0]  ;;  %v1035_v48 = vld [vmem:[%s1643_s2 + $0x4] sm:$0xf]  ;;  %v828_v50 = vld [vmem:[%s1643_s2 + $0x8] sm:$0xf0] }
  0x1b   :  { %v827_v49 = vor.u32 %v1036_v47, %v826_v46  ;;  %v895_v51 = vld [vmem:[%s1644_s3] sm:$0xf]  ;;  %v1052_v52 = vld [vmem:[%s1644_s3 + $0x4] sm:$0xf0]  ;;  %v831_v53 = vor.u32 %v1035_v48, %v828_v50  ;;  %v1051_v55 = vld [vmem:[%s1644_s3 + $0x4] sm:$0xf] }
  0x1c   :  { %475 = vmatpush.bf16.msrb.mxu0 %v936_v5  ;;  %v896_v54 = vor.u32 %v1052_v52, %v895_v51  ;;  %v897_v56 = vld [vmem:[%s1644_s3 + $0x8] sm:$0xf0]  ;;  %v36_v60 = vld [vmem:[%s1646_s5] ss:$4 sm:$0x3]  ;;  %v1082_v17 = vld [vmem:[%s1647_s4 + $0x78] sm:$0xff] }
  0x1d   :  { %494 = vmatpush.bf16.msrb.mxu1 %v940_v6  ;;  %247 = vmatpush.bf16.msra.mxu2 %v843_v25  ;;  %v900_v57 = vor.u32 %v1051_v55, %v897_v56  ;;  %v39_v61 = vperm.slane %v36_v60, 1  ;;  %v38_v62 = vperm.slane %v36_v60, 0  ;;  %v1081_v18 = vld [vmem:[%s1647_s4 + $0x70] sm:$0xff]  ;;  %v892_v22 = vld [vmem:[%s1646_s5 + $0x2] ss:$4 sm:$0x3] }
  0x1e   :  { %266 = vmatpush.bf16.msra.mxu3 %v847_v28  ;;  %v1079_v23 = vld [vmem:[%s1647_s4 + $0x60] sm:$0xff]  ;;  %v1072_v24 = vld [vmem:[%s1647_s4 + $0x28] sm:$0xff]  ;;  %v1452_v25 = vperm.slane %v892_v22, 1  ;;  %v1078_v26 = vld [vmem:[%s1647_s4 + $0x58] sm:$0xff] }
  0x1f   :  { %v823_v27 = vld [vmem:[%s1646_s5 + $0x1] ss:$4 sm:$0x3]  ;;  %v1070_v34 = vld [vmem:[%s1647_s4 + $0x18] sm:$0xff]  ;;  %v1069_v40 = vld [vmem:[%s1647_s4 + $0x10] sm:$0xff] }
  0x20   :  { %476 = vmatpush.bf16.msrb.mxu0 %v928_v13  ;;  %v1071_v29 = vld [vmem:[%s1647_s4 + $0x20] sm:$0xff]  ;;  %v1464_v31 = vperm.slane %v823_v27, 1  ;;  %v1068_v48 = vld [vmem:[%s1647_s4 + $0x8] sm:$0xff] }
  0x21   :  { %495 = vmatpush.bf16.msrb.mxu1 %v932_v14  ;;  %248 = vmatpush.bf16.msra.mxu2 %v835_v37  ;;  %v1076_v37 = vld [vmem:[%s1647_s4 + $0x48] sm:$0xff]  ;;  %v1075_v43 = vld [vmem:[%s1647_s4 + $0x40] sm:$0xff] }
  0x22   :  { %267 = vmatpush.bf16.msra.mxu3 %v839_v41  ;;  %v1067_v56 = vld [vmem:[%s1647_s4] sm:$0xff] }
  0x23   :  { %820 = vmatmul.msk.bf16.gmra.mxu0 %vm92_vm0, %v1026_v21 }
  0x24   :  { %477 = vmatpush.bf16.msrb.mxu0 %v920_v19  ;;  %822 = vmatmul.msk.bf16.gmra.mxu1 %vm92_vm0, %v1026_v21  ;;  %v1074_v19 = vld [vmem:[%s1647_s4 + $0x38] sm:$0xff]  ;;  %v1073_v21 = vld [vmem:[%s1647_s4 + $0x30] sm:$0xff] }
  0x25   :  { %496 = vmatpush.bf16.msrb.mxu1 %v924_v20  ;;  %249 = vmatpush.bf16.msra.mxu2 %v827_v49  ;;  %v1080_v20 = vld [vmem:[%s1647_s4 + $0x68] sm:$0xff] }
  0x26   :  { %268 = vmatpush.bf16.msra.mxu3 %v831_v53 }
  0x28   :  { %478 = vmatpush.bf16.msrb.mxu0 %v912_v32  ;;  %v1077_v32 = vld [vmem:[%s1647_s4 + $0x50] sm:$0xff] }
  0x29   :  { %497 = vmatpush.bf16.msrb.mxu1 %v916_v33  ;;  %733 = vmatpush.bf16.msrb.mxu2 %v1074_v19 }
  0x2a   :  { %752 = vmatpush.bf16.msrb.mxu3 %v1082_v17 }
  0x2c   :  { %479 = vmatpush.bf16.msrb.mxu0 %v904_v42 }
  0x2d   :  { %498 = vmatpush.bf16.msrb.mxu1 %v908_v45  ;;  %734 = vmatpush.bf16.msrb.mxu2 %v1073_v21 }
  0x2e   :  { %753 = vmatpush.bf16.msrb.mxu3 %v1081_v18 }
  0x30   :  { %480 = vmatpush.bf16.msrb.mxu0 %v896_v54 }
  0x31   :  { %499 = vmatpush.bf16.msrb.mxu1 %v900_v57  ;;  %735 = vmatpush.bf16.msrb.mxu2 %v1072_v24 }
  0x32   :  { %754 = vmatpush.bf16.msrb.mxu3 %v1080_v20 }
  0x35   :  { %736 = vmatpush.bf16.msrb.mxu2 %v1071_v29 }
  0x36   :  { %755 = vmatpush.bf16.msrb.mxu3 %v1079_v23 }
  0x39   :  { %737 = vmatpush.bf16.msrb.mxu2 %v1070_v34 }
  0x3a   :  { %756 = vmatpush.bf16.msrb.mxu3 %v1078_v26 }
  0x3d   :  { %738 = vmatpush.bf16.msrb.mxu2 %v1069_v40 }
  0x3e   :  { %757 = vmatpush.bf16.msrb.mxu3 %v1077_v32 }
  0x41   :  { %739 = vmatpush.bf16.msrb.mxu2 %v1068_v48 }
  0x42   :  { %758 = vmatpush.bf16.msrb.mxu3 %v1076_v37 }
  0x45   :  { %740 = vmatpush.bf16.msrb.mxu2 %v1067_v56 }
  0x46   :  { %759 = vmatpush.bf16.msrb.mxu3 %v1075_v43 }
  0x90   :  { %v108_v58 = vpop.f32.mrf.mxu0 }
  0x91   :  { %v127_v59 = vpop.f32.mrf.mxu1  ;;  %v1406_v1 = vadd.f32 %v108_v58, %v38_v62  ;;  %v1493_v58 = vperm.slane %v892_v22, 0 }
  0x92   :  { %v1404_v63 = vadd.f32 %v127_v59, %v39_v61  ;;  %v1495_v59 = vperm.slane %v823_v27, 0 }
  0x98   :  { %v110_v0 = vpop.f32.mrf.mxu0 }
  0x99   :  { %v1408_v2 = vadd.f32 %v110_v0, %v38_v62  ;;  %v129_v3 = vpop.f32.mrf.mxu1 }
  0x9a   :  { %v1410_v4 = vadd.f32 %v129_v3, %v39_v61 }
  0x9b   :  { %v137_v5 = vpack.c.bf16 %v1408_v2, %v1406_v1 }
  0x9c   :  { %v368_v6 = vpack.c.bf16 %v1410_v4, %v1404_v63 }
  0x9d   :  { %250 = vmatmul.bf16.vlgmr.msra.gmra.mxu2 %v137_v5  ;;  %269 = vmatmul.bf16.vlgmr.msra.gmra.mxu3 %v137_v5 }
  0x9e   :  { %481 = vmatmul.bf16.vlgmr.msrb.gmra.mxu0 %v368_v6  ;;  %500 = vmatmul.bf16.vlgmr.msrb.gmra.mxu1 %v368_v6 }
  0xa0   :  { %v113_v7 = vpop.f32.mrf.mxu0 }
  0xa1   :  { %v132_v8 = vpop.f32.mrf.mxu1  ;;  %v1418_v11 = vadd.f32 %v113_v7, %v38_v62 }
  0xa2   :  { %v1416_v9 = vadd.f32 %v132_v8, %v39_v61 }
  0xa8   :  { %v115_v10 = vpop.f32.mrf.mxu0 }
  0xa9   :  { %v1420_v12 = vadd.f32 %v115_v10, %v38_v62  ;;  %v134_v13 = vpop.f32.mrf.mxu1 }
  0xaa   :  { %v1422_v14 = vadd.f32 %v134_v13, %v39_v61 }
  0xab   :  { %v138_v15 = vpack.c.bf16 %v1420_v12, %v1418_v11 }
  0xac   :  { %v369_v16 = vpack.c.bf16 %v1422_v14, %v1416_v9 }
  0xad   :  { %255 = vmatmul.bf16.gmra.mxu2 %v138_v15  ;;  %274 = vmatmul.bf16.gmra.mxu3 %v138_v15 }
  0xae   :  { %486 = vmatmul.bf16.gmra.mxu0 %v369_v16  ;;  %505 = vmatmul.bf16.gmra.mxu1 %v369_v16 }
 0x11b   :  { %v501_v28 = vpop.f32.mrf.mxu1  ;;  %v482_v42 = vpop.f32.mrf.mxu0 }
 0x11c   :  { %v502_v30 = vadd.f32 %v501_v28, %v1452_v25  ;;  %v483_v13 = vadd.f32 %v482_v42, %v1493_v58 }
 0x11e   :  { %v957_v33 = vmul.f32 -1.442695, %v502_v30 }
 0x120   :  { %1084 = vpow2.f32 %v957_v33  ;;  %v270_v35 = vpop.f32.mrf.mxu3  ;;  %v251_v45 = vpop.f32.mrf.mxu2 }
 0x121   :  { %v271_v36 = vadd.f32 %v270_v35, %v1464_v31  ;;  %v1504_v16 = vadd.f32 %v251_v45, %v1495_v59 }
 0x123   :  { %v888_v38 = vmul.f32 -1.442695, %v271_v36  ;;  %v503_v39 = vpop.f32.mrf.mxu1  ;;  %v484_v62 = vpop.f32.mrf.mxu0 }
 0x124   :  { %v504_v41 = vadd.f32 %v503_v39, %v1452_v25  ;;  %v1507_v17 = vadd.f32 %v484_v62, %v1493_v58 }
 0x125   :  { %1086 = vpow2.f32 %v888_v38 }
 0x126   :  { %v1085_v44 = vpop.eup %1084  ;;  %v958_v46 = vmul.f32 -1.442695, %v504_v41 }
 0x127   :  { %v523_v47 = vadd.f32 1.0, %v1085_v44 }
 0x128   :  { %1088 = vpow2.f32 %v958_v46  ;;  %v272_v49 = vpop.f32.mrf.mxu3  ;;  %v253_v5 = vpop.f32.mrf.mxu2 }
 0x129   :  { %1090 = vrcp.f32 %v523_v47  ;;  %v273_v50 = vadd.f32 %v272_v49, %v1464_v31  ;;  %v536_v8 = vand.u32 2147483647, %v523_v47  ;;  %v538_v10 = vand.u32 2147483648, %v523_v47 }
 0x12a   :  { %v1510_v19 = vadd.f32 %v253_v5, %v1495_v59  ;;  %vm532_vm1 = vweird.f32 %v523_v47 }
 0x12b   :  { %v1087_v51 = vpop.eup %1086  ;;  %v889_v52 = vmul.f32 -1.442695, %v273_v50  ;;  %v506_v53 = vpop.f32.mrf.mxu1  ;;  %vm1517_vm3 = vcmp.eq.f32.partialorder %v536_v8, 8.507059e+37  ;;  %v539_v30 = vor.u32 1.1754944e-38, %v538_v10 }
 0x12c   :  { %v1487_v54 = vadd.f32 1.0, %v1087_v51  ;;  %v507_v55 = vadd.f32 %v506_v53, %v1452_v25 }
 0x12d   :  { %1092 = vpow2.f32 %v889_v52 }
 0x12e   :  { %v1089_v57 = vpop.eup %1088  ;;  %1094 = vrcp.f32 %v1487_v54  ;;  %v959_v60 = vmul.f32 -1.442695, %v507_v55  ;;  %v305_v22 = vand.u32 2147483647, %v1487_v54  ;;  %vm301_vm4 = vweird.f32 %v1487_v54 }
 0x12f   :  { %v1091_v61 = vpop.eup %1090  ;;  %v1498_v0 = vadd.f32 1.0, %v1089_v57  ;;  %v307_v38 = vand.u32 2147483648, %v1487_v54 }
 0x130   :  { %v528_v3 = vmul.f32 %v1091_v61, %v523_v47  ;;  %1096 = vpow2.f32 %v959_v60  ;;  %v275_v6 = vpop.f32.mrf.mxu3  ;;  %vm533_vm2 = vweird.f32 %v1091_v61  ;;  %vm1529_vm6 = vcmp.eq.f32.partialorder %v305_v22, 8.507059e+37  ;;  %v487_v22 = vpop.f32.mrf.mxu0 }
 0x131   :  { %1098 = vrcp.f32 %v1498_v0  ;;  %v276_v7 = vadd.f32 %v275_v6, %v1464_v31  ;;  %vm534_vm5 = vmor %vm532_vm1, %vm533_vm2  ;;  %v551_v37 = vand.u32 2147483647, %v1498_v0  ;;  %v553_v45 = vand.u32 2147483648, %v1498_v0 }
 0x132   :  { %v529_v15 = vsub.f32 1.0, %v528_v3  ;;  %vm547_vm7 = vweird.f32 %v1498_v0  ;;  %v308_v51 = vor.u32 1.1754944e-38, %v307_v38 }
 0x133   :  { %v1093_v18 = vpop.eup %1092  ;;  %v890_v20 = vmul.f32 -1.442695, %v276_v7  ;;  %v508_v21 = vpop.f32.mrf.mxu1  ;;  %vm1539_vm10 = vcmp.eq.f32.partialorder %v551_v37, 8.507059e+37  ;;  %v554_v60 = vor.u32 1.1754944e-38, %v553_v45 }
 0x134   :  { %v1095_v23 = vpop.eup %1094  ;;  %v1513_v24 = vadd.f32 1.0, %v1093_v18  ;;  %v509_v26 = vadd.f32 %v508_v21, %v1452_v25  ;;  %v530_v27 = vmul.f32 %v1091_v61, %v529_v15 }
 0x135   :  { %v297_v28 = vmul.f32 %v1095_v23, %v1487_v54  ;;  %1100 = vpow2.f32 %v890_v20  ;;  %vm302_vm8 = vweird.f32 %v1095_v23 }
 0x136   :  { %v1097_v32 = vpop.eup %1096  ;;  %1102 = vrcp.f32 %v1513_v24  ;;  %v960_v33 = vmul.f32 -1.442695, %v509_v26  ;;  %v531_v34 = vadd.f32 %v1091_v61, %v530_v27  ;;  %vm303_vm11 = vmor %vm301_vm4, %vm302_vm8  ;;  %vm316_vm12 = vweird.f32 %v1513_v24 }
 0x137   :  { %v1099_v35 = vpop.eup %1098  ;;  %v298_v36 = vsub.f32 1.0, %v297_v28  ;;  %v1523_v25 = vadd.f32 1.0, %v1097_v32  ;;  %v320_v5 = vand.u32 2147483647, %v1513_v24  ;;  %v322_v10 = vand.u32 2147483648, %v1513_v24 }
 0x138   :  { %v543_v39 = vmul.f32 %v1099_v35, %v1498_v0  ;;  %1104 = vpow2.f32 %v960_v33  ;;  %v277_v40 = vpop.f32.mrf.mxu3  ;;  %v535_v41 = vsel %vm534_vm5, %v1091_v61, %v531_v34  ;;  %vm548_vm9 = vweird.f32 %v1099_v35 }
 0x139   :  { %1106 = vrcp.f32 %v1523_v25  ;;  %v278_v43 = vadd.f32 %v277_v40, %v1464_v31  ;;  %v540_v44 = vsel %vm1517_vm3, %v539_v30, %v535_v41  ;;  %v299_v47 = vmul.f32 %v1095_v23, %v298_v36  ;;  %vm549_vm13 = vmor %vm547_vm7, %vm548_vm9 }
 0x13a   :  { %v544_v46 = vsub.f32 1.0, %v543_v39  ;;  %v587_v55 = vmul.f32 %v540_v44, %v483_v13  ;;  %vm1566_vm15 = vcmp.eq.f32.partialorder %v320_v5, 8.507059e+37  ;;  %vm562_vm0 = vweird.f32 %v1523_v25  ;;  %v256_v44 = vpop.f32.mrf.mxu2 }
 0x13b   :  { %v1101_v48 = vpop.eup %1100  ;;  %v891_v49 = vmul.f32 -1.442695, %v278_v43  ;;  %v300_v56 = vadd.f32 %v1095_v23, %v299_v47  ;;  %v323_v29 = vor.u32 1.1754944e-38, %v322_v10  ;;  %v566_v30 = vand.u32 2147483647, %v1523_v25 }
 0x13c   :  { %v1103_v52 = vpop.eup %1102  ;;  %v1543_v31 = vadd.f32 1.0, %v1101_v48  ;;  %v545_v53 = vmul.f32 %v1099_v35, %v544_v46  ;;  %v591_v18 = vadd.f32 %v587_v55, %v1404_v63  ;;  %v568_v34 = vand.u32 2147483648, %v1523_v25 }
 0x13d   :  { %v312_v57 = vmul.f32 %v1103_v52, %v1513_v24  ;;  %1108 = vpow2.f32 %v891_v49  ;;  %v304_v3 = vsel %vm303_vm11, %v1095_v23, %v300_v56  ;;  %vm317_vm14 = vweird.f32 %v1103_v52 }
 0x13e   :  { %v1105_v61 = vpop.eup %1104  ;;  %1110 = vrcp.f32 %v1543_v31  ;;  %v546_v62 = vadd.f32 %v1099_v35, %v545_v53  ;;  %v309_v54 = vsel %vm1529_vm6, %v308_v51, %v304_v3  ;;  %vm318_vm2 = vmor %vm316_vm12, %vm317_vm14  ;;  %v595_v36 = vmax.f32 %v591_v18, 0.0 }
 0x13f   :  { %v1107_v6 = vpop.eup %1106  ;;  %v313_v7 = vsub.f32 1.0, %v312_v57  ;;  %v1551_v8 = vadd.f32 1.0, %v1105_v61  ;;  %v356_v0 = vmul.f32 %v309_v54, %v1504_v16  ;;  %vm1592_vm4 = vcmp.eq.f32.partialorder %v566_v30, 8.507059e+37  ;;  %v489_v61 = vpop.f32.mrf.mxu0 }
 0x140   :  { %v558_v13 = vmul.f32 %v1107_v6, %v1523_v25  ;;  %v550_v15 = vsel %vm549_vm13, %v1099_v35, %v546_v62  ;;  %vm563_vm1 = vweird.f32 %v1107_v6  ;;  %v569_v48 = vor.u32 1.1754944e-38, %v568_v34 }
 0x141   :  { %1112 = vrcp.f32 %v1551_v8  ;;  %v555_v20 = vsel %vm1539_vm10, %v554_v60, %v550_v15  ;;  %v314_v21 = vmul.f32 %v1103_v52, %v313_v7  ;;  %v360_v38 = vadd.f32 %v356_v0, %v1406_v1  ;;  %vm1588_vm3 = vmor %vm562_vm0, %vm563_vm1 }
 0x142   :  { %v559_v23 = vsub.f32 1.0, %v558_v13  ;;  %v588_v26 = vmul.f32 %v555_v20, %v1507_v17  ;;  %v583_v25 = vand.u32 2147483648, %v1551_v8  ;;  %vm331_vm6 = vweird.f32 %v1543_v31 }
 0x143   :  { %v1109_v63 = vpop.eup %1108  ;;  %v315_v28 = vadd.f32 %v1103_v52, %v314_v21  ;;  %v364_v51 = vmax.f32 %v360_v38, 0.0  ;;  %v335_v57 = vand.u32 2147483647, %v1543_v31  ;;  %v581_v3 = vand.u32 2147483647, %v1551_v8 }
 0x144   :  { %v1111_v32 = vpop.eup %1110  ;;  %v1572_v33 = vadd.f32 1.0, %v1109_v63  ;;  %v592_v16 = vadd.f32 %v588_v26, %v1410_v4  ;;  %v560_v17 = vmul.f32 %v1107_v6, %v559_v23  ;;  %vm577_vm9 = vweird.f32 %v1551_v8 }
 0x145   :  { %v327_v35 = vmul.f32 %v1111_v32, %v1543_v31  ;;  %v319_v37 = vsel %vm318_vm2, %v1103_v52, %v315_v28  ;;  %vm332_vm5 = vweird.f32 %v1111_v32  ;;  %v337_v52 = vand.u32 2147483648, %v1543_v31 }
 0x146   :  { %1114 = vrcp.f32 %v1572_v33  ;;  %v596_v39 = vmax.f32 %v592_v16, 0.0  ;;  %v324_v40 = vsel %vm1566_vm15, %v323_v29, %v319_v37  ;;  %v561_v4 = vadd.f32 %v1107_v6, %v560_v17  ;;  %vm1609_vm8 = vmor %vm331_vm6, %vm332_vm5 }
 0x147   :  { %v1113_v41 = vpop.eup %1112  ;;  %v328_v42 = vsub.f32 1.0, %v327_v35  ;;  %v357_v24 = vmul.f32 %v324_v40, %v1510_v19  ;;  %v338_v15 = vor.u32 1.1754944e-38, %v337_v52  ;;  %v490_v18 = vadd.f32 %v489_v61, %v1493_v58 }
 0x148   :  { %v573_v45 = vmul.f32 %v1113_v41, %v1551_v8  ;;  %v600_v46 = vpack.c.bf16 %v596_v39, %v595_v36  ;;  %v565_v47 = vsel %vm1588_vm3, %v1107_v6, %v561_v4  ;;  %vm578_vm7 = vweird.f32 %v1113_v41  ;;  %v258_v8 = vpop.f32.mrf.mxu2 }
 0x149   :  { %v361_v19 = vadd.f32 %v357_v24, %v1408_v2  ;;  %v329_v49 = vmul.f32 %v1111_v32, %v328_v42  ;;  %v570_v55 = vsel %vm1592_vm4, %v569_v48, %v565_v47  ;;  %v488_v2 = vadd.f32 %v487_v22, %v1493_v58  ;;  %vm579_vm10 = vmor %vm577_vm9, %vm578_vm7 }
 0x14a   :  { %v574_v50 = vsub.f32 1.0, %v573_v45  ;;  %760 = vmatmul.bf16.vlgmr.msrb.gmra.mxu3 %v600_v46  ;;  %v257_v6 = vadd.f32 %v256_v44, %v1495_v59  ;;  %v584_v21 = vor.u32 1.1754944e-38, %v583_v25  ;;  %vm336_vm11 = vcmp.eq.f32.partialorder %v335_v57, 8.507059e+37 }
 0x14b   :  { %v365_v53 = vmax.f32 %v361_v19, 0.0  ;;  %v330_v56 = vadd.f32 %v1111_v32, %v329_v49  ;;  %v589_v13 = vmul.f32 %v570_v55, %v488_v2  ;;  %vm582_vm12 = vcmp.eq.f32.partialorder %v581_v3, 8.507059e+37 }
 0x14c   :  { %v1115_v60 = vpop.eup %1114  ;;  %v575_v62 = vmul.f32 %v1113_v41, %v574_v50  ;;  %v352_v23 = vand.u32 2147483648, %v1572_v33  ;;  %v350_v63 = vand.u32 2147483647, %v1572_v33  ;;  %vm346_vm14 = vweird.f32 %v1572_v33 }
 0x14d   :  { %v342_v7 = vmul.f32 %v1115_v60, %v1572_v33  ;;  %v599_v54 = vpack.c.bf16 %v365_v53, %v364_v51  ;;  %v334_v31 = vsel %vm1609_vm8, %v1111_v32, %v330_v56  ;;  %vm347_vm13 = vweird.f32 %v1115_v60 }
 0x14e   :  { %v576_v10 = vadd.f32 %v1113_v41, %v575_v62  ;;  %v339_v22 = vsel %vm336_vm11, %v338_v15, %v334_v31  ;;  %v593_v29 = vadd.f32 %v589_v13, %v1416_v9  ;;  %vm348_vm15 = vmor %vm346_vm14, %vm347_vm13  ;;  %v353_v16 = vor.u32 1.1754944e-38, %v352_v23 }
 0x14f   :  { %v343_v20 = vsub.f32 1.0, %v342_v7  ;;  %741 = vmatmul.bf16.vlgmr.msrb.gmra.mxu2 %v599_v54  ;;  %v358_v30 = vmul.f32 %v339_v22, %v257_v6  ;;  %v259_v17 = vadd.f32 %v258_v8, %v1495_v59  ;;  %vm351_vm0 = vcmp.eq.f32.partialorder %v350_v63, 8.507059e+37  ;;  %v1083_v59 = vld [vmem:[%s1646_s5 + $0x3] ss:$0 sm:$0xff] }
 0x150   :  { %v580_v0 = vsel %vm579_vm10, %v1113_v41, %v576_v10  ;;  %v597_v35 = vmax.f32 %v593_v29, 0.0 }
 0x151   :  { %v585_v26 = vsel %vm582_vm12, %v584_v21, %v580_v0  ;;  %v344_v27 = vmul.f32 %v1115_v60, %v343_v20  ;;  %v362_v39 = vadd.f32 %v358_v30, %v1418_v11 }
 0x152   :  { %v590_v28 = vmul.f32 %v585_v26, %v490_v18 }
 0x153   :  { %v345_v58 = vadd.f32 %v1115_v60, %v344_v27  ;;  %v366_v33 = vmax.f32 %v362_v39, 0.0 }
 0x154   :  { %v594_v32 = vadd.f32 %v590_v28, %v1422_v14 }
 0x155   :  { %v349_v34 = vsel %vm348_vm15, %v1115_v60, %v345_v58 }
 0x156   :  { %v598_v36 = vmax.f32 %v594_v32, 0.0  ;;  %v354_v37 = vsel %vm351_vm0, %v353_v16, %v349_v34 }
 0x157   :  { %v359_v38 = vmul.f32 %v354_v37, %v259_v17 }
 0x158   :  { %v602_v40 = vpack.c.bf16 %v598_v36, %v597_v35 }
 0x159   :  { %v363_v9 = vadd.f32 %v359_v38, %v1420_v12 }
 0x15a   :  { %765 = vmatmul.bf16.gmra.mxu3 %v602_v40 }
 0x15b   :  { %v367_v4 = vmax.f32 %v363_v9, 0.0 }
 0x15d   :  { %v601_v41 = vpack.c.bf16 %v367_v4, %v366_v33 }
 0x15f   :  { %746 = vmatmul.bf16.gmra.mxu2 %v601_v41 }
 0x1cd   :  { %v761_v14 = vpop.f32.mrf.mxu3 }
 0x1d2   :  { %v742_v42 = vpop.f32.mrf.mxu2 }
 0x1d3   :  { %v743_v24 = vadd.f32 %v1083_v59, %v742_v42 }
 0x1d5   :  { %v762_v43 = vadd.f32 %v761_v14, %v743_v24  ;;  %v763_v11 = vpop.f32.mrf.mxu3 }
 0x1d7   :  { %771 = vst [vmem:[%s1648_s6] sm:$0xff] %v762_v43 }
 0x1da   :  { %v744_v1 = vpop.f32.mrf.mxu2 }
 0x1db   :  { %v745_v12 = vadd.f32 %v1083_v59, %v744_v1 }
 0x1dd   :  { %v764_v44 = vadd.f32 %v763_v11, %v745_v12  ;;  %v766_v45 = vpop.f32.mrf.mxu3 }
 0x1df   :  { %772 = vst [vmem:[%s1648_s6 + $0x8] sm:$0xff] %v764_v44 }
 0x1e2   :  { %v747_v46 = vpop.f32.mrf.mxu2 }
 0x1e3   :  { %v748_v47 = vadd.f32 %v1083_v59, %v747_v46 }
 0x1e5   :  { %v767_v48 = vadd.f32 %v766_v45, %v748_v47  ;;  %v768_v49 = vpop.f32.mrf.mxu3 }
 0x1e7   :  { %773 = vst [vmem:[%s1648_s6 + $0x10] sm:$0xff] %v767_v48 }
 0x1ea   :  { %v749_v19 = vpop.f32.mrf.mxu2 }
 0x1eb   :  { %v750_v25 = vadd.f32 %v1083_v59, %v749_v19 }
 0x1ed   :  { %v769_v50 = vadd.f32 %v768_v49, %v750_v25 }
 0x1ef   :  { %774 = vst [vmem:[%s1648_s6 + $0x18] sm:$0xff] %v769_v50 }

</bundles_post_ra>
